<compile_context>
chip_gen: v7x
topology: tpu7x:2x2x1
jax: 0.10.0
libtpu: 0.0.40
codegen_flags: <defaults>
</compile_context>

<pallas_src>
import math

import jax
import jax.numpy as jnp
from jax.experimental import pallas as pl
from jax.experimental.pallas import tpu as pltpu

_NEG_INF = -1e30
_EPS2 = 1e-24  # (1e-12)^2 -> matches F.normalize eps applied to the norm


def _round_up(a, b):
    return (a + b - 1) // b * b


def _choose_tiles(B, C, D, compute_bytes, out_bytes, max_tb=None, max_tc=None):
    """Pick (TB, TC) tiles under a VMEM working-set budget (v7x-safe)."""
    tb_cap = 512 if max_tb is None else max(8, _round_up(max_tb, 8))
    tc_cap = 2048 if max_tc is None else max(128, _round_up(max_tc, 128))

    B8 = _round_up(B, 8)
    TB = B8 if B8 <= tb_cap else tb_cap          # B8 > 512 => B_pad >= 1024 => nb >= 2
    C128 = _round_up(C, 128)
    TC = C128 if C128 <= tc_cap else tc_cap

    # Keep the multi-buffered per-step working set under ~40 MiB so it also fits
    # v7x's 64 MiB physical VMEM with headroom below the 48 MiB scoped limit.
    budget = 40 * 1024 * 1024

    def vmem(tb, tc):
        return (2 * tb * D * compute_bytes          # x (double-buffered, resident per b)
                + 3 * tc * D * compute_bytes        # W stream (up to triple-buffered)
                + 2 * tb * tc * out_bytes           # logits writeback
                + 4 * tc * 4 + 12 * tb * 4)         # inv_w/bias rows, inv_x/label/loss/scratch

    while vmem(TB, TC) > budget and TC > 128:
        TC = max(128, _round_up(TC // 2, 128))
    while vmem(TB, TC) > budget and TB > 8:
        TB = max(8, _round_up(TB // 2, 8))

    B_pad = _round_up(B, TB)
    C_pad = _round_up(C, TC)
    return TB, TC, B_pad, C_pad


def _make_kernel(scale, cos_m, sin_m, theta, custom_m, tc):
    """Kernel body with margin constants / tile geometry closed over."""
    inv_scale = 1.0 / scale

    def kernel(x_ref, w_ref, invw_ref, bias_ref, invx_ref, label_ref,   # inputs
               out_ref, loss_ref,                                       # outputs
               l_s, t_s):                                               # (TB,1) scratch
        c = pl.program_id(1)
        nc = pl.num_programs(1)

        @pl.when(c == 0)
        def _init():
            l_s[...] = jnp.zeros_like(l_s)
            t_s[...] = jnp.zeros_like(t_s)

        # Raw matmul on the MXU; W consumed in its natural (TC, D) layout
        # (contraction on both last dims; no materialized transpose).
        raw = jax.lax.dot_general(
            x_ref[...], w_ref[...],
            dimension_numbers=(((1,), (1,)), ((), ())),
            preferred_element_type=jnp.float32)                         # (TB, TC)

        # Scaled cosine = raw * (1/||x||, from wrapper) * (scale/||w||, streamed).
        cos_s = raw * invx_ref[...] * invw_ref[...]                     # (TB, TC)

        # Target column via per-tile relative label (no global column ids).
        rel = label_ref[...] - c * tc                                   # (TB, 1) int32
        lane = jax.lax.broadcasted_iota(jnp.int32, cos_s.shape, 1)
        is_tgt = lane == rel                                            # (TB, TC)
        in_tile = (rel >= 0) & (rel < tc)                               # (TB, 1)

        # Margin math only on the (TB, 1) target value.
        t_cos_s = jnp.sum(jnp.where(is_tgt, cos_s, 0.0),
                          axis=-1, keepdims=True)                       # (TB, 1)
        t_cos = t_cos_s * inv_scale
        sine = jnp.sqrt(jnp.maximum(1.0 - t_cos * t_cos, 0.0))
        phi = t_cos * cos_m - sine * sin_m
        phi = jnp.where(t_cos > theta, phi, t_cos - custom_m)           # easy_margin=False
        phi_s = phi * scale                                             # (TB, 1)

        logits = jnp.where(is_tgt, phi_s, cos_s)                        # (TB, TC) f32
        out_ref[...] = logits.astype(out_ref.dtype)

        # Streaming sum-exp with a fixed max (= scale): bias row carries
        # -scale for real classes and -inf for padded classes, so a single
        # add handles both the max shift and the pad mask.
        l_s[...] += jnp.sum(jnp.exp(logits + bias_ref[...]),
                            axis=-1, keepdims=True)
        t_s[...] += jnp.where(in_tile, phi_s, 0.0)

        @pl.when(c == nc - 1)
        def _finalize():
            # per-row cross entropy: logsumexp - target_logit
            loss_ref[...] = scale + jnp.log(l_s[...]) - t_s[...]

    return kernel


def _w_blockspec(tc, d, nc):
    idx = lambda b, c: (c, 0)
    # Triple-buffer the streamed W tiles when there are enough class steps
    # (hides the W DMA under compute jitter, mainly helps v5e's slower HBM).
    if nc >= 3 and hasattr(pl, "Buffered"):
        try:
            return pl.BlockSpec((tc, d), idx, pipeline_mode=pl.Buffered(3))
        except TypeError:  # older BlockSpec signature without pipeline_mode
            pass
    return pl.BlockSpec((tc, d), idx)


def final_layer_forward(x, weight, label, scale=30.0, margin=0.5,
                        compute_dtype=jnp.bfloat16, logits_dtype=jnp.bfloat16,
                        max_tb=None, max_tc=None):
    """ArcFace FinalLayer forward.

    Returns (logits (B, C) in `logits_dtype`, mean CE loss scalar f32).
    Production path: bf16 MXU inputs + bf16 logits writeback (f32 math inside).
    Use compute_dtype=logits_dtype=jnp.float32 for a bit-accurate test path.
    """
    B, D = x.shape
    C, D_w = weight.shape
    assert D == D_w

    cos_m = math.cos(margin)
    sin_m = math.sin(margin)
    theta = math.cos(math.pi - margin)
    custom_m = math.sin(math.pi - margin) * margin

    compute_bytes = jnp.dtype(compute_dtype).itemsize
    out_bytes = jnp.dtype(logits_dtype).itemsize
    TB, TC, B_pad, C_pad = _choose_tiles(B, C, D, compute_bytes, out_bytes,
                                         max_tb, max_tc)

    xf = x.astype(jnp.float32)
    wf = weight.astype(jnp.float32)

    # Per-row / per-class inverse norms computed once from f32 inputs
    # (matches F.normalize numerics, even on the bf16 matmul path).
    inv_x = jax.lax.rsqrt(jnp.maximum(jnp.sum(xf * xf, axis=-1, keepdims=True),
                                      _EPS2))                           # (B, 1)
    inv_x = jnp.pad(inv_x, ((0, B_pad - B), (0, 0))).astype(jnp.float32)

    inv_w = jax.lax.rsqrt(jnp.maximum(jnp.sum(wf * wf, axis=-1), _EPS2)) * scale
    inv_w = jnp.pad(inv_w, (0, C_pad - C)).reshape(1, C_pad).astype(jnp.float32)

    # Additive per-class bias: folds the fixed logsumexp shift (-scale) and the
    # padded-class mask (-inf) into one streamed row.
    cls_bias = jnp.where(jnp.arange(C_pad) < C,
                         jnp.float32(-scale), jnp.float32(_NEG_INF)).reshape(1, C_pad)

    x_p = jnp.pad(xf, ((0, B_pad - B), (0, 0))).astype(compute_dtype)
    w_p = jnp.pad(wf, ((0, C_pad - C), (0, 0))).astype(compute_dtype)
    lbl = jnp.pad(label.astype(jnp.int32), (0, B_pad - B)).reshape(B_pad, 1)

    nb = B_pad // TB
    nc = C_pad // TC

    kernel = _make_kernel(scale, cos_m, sin_m, theta, custom_m, TC)

    out, per_row_loss = pl.pallas_call(
        kernel,
        out_shape=(
            jax.ShapeDtypeStruct((B_pad, C_pad), logits_dtype),
            jax.ShapeDtypeStruct((B_pad, 1), jnp.float32),
        ),
        grid_spec=pltpu.PrefetchScalarGridSpec(
            num_scalar_prefetch=0,
            grid=(nb, nc),                                       # class axis last (reduction)
            in_specs=[
                pl.BlockSpec((TB, D), lambda b, c: (b, 0)),      # x: resident per batch tile
                _w_blockspec(TC, D, nc),                         # W: streamed class tiles
                pl.BlockSpec((1, TC), lambda b, c: (0, c)),      # scale / ||w|| row
                pl.BlockSpec((1, TC), lambda b, c: (0, c)),      # class bias row
                pl.BlockSpec((TB, 1), lambda b, c: (b, 0)),      # 1 / ||x||
                pl.BlockSpec((TB, 1), lambda b, c: (b, 0)),      # labels
            ],
            out_specs=(
                pl.BlockSpec((TB, TC), lambda b, c: (b, c)),     # logits (lane-dense)
                pl.BlockSpec((TB, 1), lambda b, c: (b, 0)),      # per-row CE loss
            ),
            scratch_shapes=[pltpu.VMEM((TB, 1), jnp.float32)] * 2,   # sum-exp, target logit
        ),
        compiler_params=pltpu.CompilerParams(
            dimension_semantics=("parallel", "arbitrary"),
            vmem_limit_bytes=48 * 1024 * 1024,                   # safe on v5e/v6e/v7x
        ),
    )(x_p, w_p, inv_w, cls_bias, inv_x, lbl)

    logits = out[:B, :C]                       # native logits_dtype (cast outside if needed)
    loss = jnp.mean(per_row_loss[:B, 0])       # mean over real (un-padded) rows only
    # TODO(synk): optional loss-only mode (skip the logits HBM writeback entirely)
    # could be added for training loops that never consume the logits.
    return logits, loss


def reference_forward(x, weight, label, scale=30.0, margin=0.5):
    """Pure-JAX reference mirroring the PyTorch forward (easy_margin=False)."""
    cos_m = math.cos(margin)
    sin_m = math.sin(margin)
    theta = math.cos(math.pi - margin)
    custom_m = math.sin(math.pi - margin) * margin

    eps = 1e-12
    x_n = x / jnp.maximum(jnp.linalg.norm(x, axis=-1, keepdims=True), eps)
    w_n = weight / jnp.maximum(jnp.linalg.norm(weight, axis=-1, keepdims=True), eps)
    cosine = x_n @ w_n.T
    sine = jnp.sqrt(jnp.maximum(1.0 - cosine ** 2, 0.0))
    phi = cosine * cos_m - sine * sin_m
    phi = jnp.where(cosine > theta, phi, cosine - custom_m)
    one_hot = jax.nn.one_hot(label, cosine.shape[1], dtype=jnp.float32)
    output = (one_hot * phi + (1.0 - one_hot) * cosine) * scale
    lse = jax.scipy.special.logsumexp(output, axis=-1)
    loss = jnp.mean(lse - jnp.take_along_axis(output, label[:, None], axis=1)[:, 0])
    return output, loss


if __name__ == "__main__":
    key = jax.random.PRNGKey(0)
    k1, k2 = jax.random.split(key)

    # --- Test 1: small single-tile problem (batch=8, in=32, out=16) ------------
    B, D, C = 8, 32, 16
    kx, kw, kl = jax.random.split(k1, 3)
    x = jax.random.normal(kx, (B, D), dtype=jnp.float32)
    w = jax.random.normal(kw, (C, D), dtype=jnp.float32) * 0.1
    lbl = jax.random.randint(kl, (B,), 0, C, dtype=jnp.int32)

    ref_out, ref_loss = reference_forward(x, w, lbl)

    # Exact-precision path (f32 MXU inputs, f32 logits out) — tight tolerance.
    out32, loss32 = final_layer_forward(x, w, lbl, compute_dtype=jnp.float32,
                                        logits_dtype=jnp.float32)
    out32, loss32 = jax.block_until_ready((out32, loss32))
    assert jnp.allclose(out32, ref_out, atol=2e-4, rtol=1e-4), "f32 logits mismatch"
    assert jnp.allclose(loss32, ref_loss, atol=2e-4, rtol=1e-4), "f32 loss mismatch"

    # Production path (bf16 MXU inputs + bf16 logits writeback) — loose tolerance.
    out16, loss16 = final_layer_forward(x, w, lbl)
    out16, loss16 = jax.block_until_ready((out16, loss16))
    assert jnp.allclose(out16.astype(jnp.float32), ref_out, atol=1.0, rtol=5e-2), \
        "bf16 logits mismatch"
    assert jnp.allclose(loss16, ref_loss, atol=1.0, rtol=5e-2), "bf16 loss mismatch"

    # --- Test 2: multi-tile streaming path with padded batch and classes -------
    # Forces TB=8 / TC=128 so nb=3, nc=3: exercises the streaming class-axis
    # accumulation, Buffered(3) W pipeline, padded-class masking and padded-row
    # exclusion from the mean loss.
    B2, D2, C2 = 20, 64, 300
    kx2, kw2, kl2 = jax.random.split(k2, 3)
    x2 = jax.random.normal(kx2, (B2, D2), dtype=jnp.float32)
    w2 = jax.random.normal(kw2, (C2, D2), dtype=jnp.float32) * 0.05
    lbl2 = jax.random.randint(kl2, (B2,), 0, C2, dtype=jnp.int32)

    ref_out2, ref_loss2 = reference_forward(x2, w2, lbl2)
    out2, loss2 = final_layer_forward(x2, w2, lbl2, compute_dtype=jnp.float32,
                                      logits_dtype=jnp.float32, max_tb=8, max_tc=128)
    out2, loss2 = jax.block_until_ready((out2, loss2))
    assert jnp.allclose(out2, ref_out2, atol=1e-3, rtol=1e-4), "multi-tile logits mismatch"
    assert jnp.allclose(loss2, ref_loss2, atol=1e-3, rtol=1e-4), "multi-tile loss mismatch"

    print("KERNEL_OK")
</pallas_src>

<mosaic_0001>
module attributes {stable_mosaic.version = 11 : i64} {
  func.func @kernel(%arg0: i32, %arg1: i32, %arg2: memref<8x32xf32, #tpu.memory_space<vmem>>, %arg3: memref<128x32xf32, #tpu.memory_space<vmem>>, %arg4: memref<1x128xf32, #tpu.memory_space<vmem>>, %arg5: memref<1x128xf32, #tpu.memory_space<vmem>>, %arg6: memref<8x1xf32, #tpu.memory_space<vmem>>, %arg7: memref<8x1xi32, #tpu.memory_space<vmem>>, %arg8: memref<8x128xf32, #tpu.memory_space<vmem>>, %arg9: memref<8x1xf32, #tpu.memory_space<vmem>>, %arg10: memref<8x1xf32, #tpu.memory_space<vmem>>, %arg11: memref<8x1xf32, #tpu.memory_space<vmem>>) attributes {dimension_semantics = [#tpu.dimension_semantics<parallel>, #tpu.dimension_semantics<arbitrary>], iteration_bounds = array<i64: 1, 1>, scalar_prefetch = 0 : i64, scratch_operands = 2 : i64, tpu.core_type = #tpu.core_type<tc>, window_params = [{transform_indices = @transform_0, window_bounds = array<i64: 8, 32>}, {transform_indices = @transform_1, window_bounds = array<i64: 128, 32>}, {transform_indices = @transform_2, window_bounds = array<i64: 1, 128>}, {transform_indices = @transform_3, window_bounds = array<i64: 1, 128>}, {transform_indices = @transform_4, window_bounds = array<i64: 8, 1>}, {transform_indices = @transform_5, window_bounds = array<i64: 8, 1>}, {transform_indices = @transform_6, window_bounds = array<i64: 8, 128>}, {transform_indices = @transform_7, window_bounds = array<i64: 8, 1>}]} {
    %c0_i32 = arith.constant 0 : i32
    %0 = arith.cmpi eq, %arg1, %c0_i32 : i32
    %1 = arith.extui %0 : i1 to i32
    %c0_i32_0 = arith.constant 0 : i32
    %2 = arith.cmpi ne, %1, %c0_i32_0 : i32
    scf.if %2 {
      %cst_38 = arith.constant 0.000000e+00 : f32
      %69 = vector.broadcast %cst_38 : f32 to vector<8x1xf32>
      %c0_39 = arith.constant 0 : index
      %c0_40 = arith.constant 0 : index
      %70 = vector.load %arg10[%c0_39, %c0_40] : memref<8x1xf32, #tpu.memory_space<vmem>>, vector<8x1xf32>
      tpu.vector_store %arg10[%c0_39, %c0_40], %69 {strides = array<i32>} : memref<8x1xf32, #tpu.memory_space<vmem>>, vector<8x1xf32>,
      %cst_41 = arith.constant 0.000000e+00 : f32
      %71 = vector.broadcast %cst_41 : f32 to vector<8x1xf32>
      %c0_42 = arith.constant 0 : index
      %c0_43 = arith.constant 0 : index
      %72 = vector.load %arg11[%c0_42, %c0_43] : memref<8x1xf32, #tpu.memory_space<vmem>>, vector<8x1xf32>
      tpu.vector_store %arg11[%c0_42, %c0_43], %71 {strides = array<i32>} : memref<8x1xf32, #tpu.memory_space<vmem>>, vector<8x1xf32>,
    } else {
    }
    %c0 = arith.constant 0 : index
    %c0_1 = arith.constant 0 : index
    %3 = vector.load %arg2[%c0, %c0_1] : memref<8x32xf32, #tpu.memory_space<vmem>>, vector<8x32xf32>
    %c0_2 = arith.constant 0 : index
    %c0_3 = arith.constant 0 : index
    %4 = vector.load %arg3[%c0_2, %c0_3] : memref<128x32xf32, #tpu.memory_space<vmem>>, vector<128x32xf32>
    %cst = arith.constant dense<0.000000e+00> : vector<8x128xf32>
    %5 = tpu.matmul %3, %4, %cst {dimension_numbers = #tpu.dot_dimension_numbers<[1], [1], [0], [0], [0, 0, 1, 0], [], []>} : vector<8x32xf32>, vector<128x32xf32>, vector<8x128xf32> -> vector<8x128xf32>
    %c0_4 = arith.constant 0 : index
    %c0_5 = arith.constant 0 : index
    %6 = vector.load %arg6[%c0_4, %c0_5] : memref<8x1xf32, #tpu.memory_space<vmem>>, vector<8x1xf32>
    %7 = vector.broadcast %6 : vector<8x1xf32> to vector<8x128xf32>
    %8 = arith.mulf %5, %7 : vector<8x128xf32>
    %c0_6 = arith.constant 0 : index
    %c0_7 = arith.constant 0 : index
    %9 = vector.load %arg4[%c0_6, %c0_7] : memref<1x128xf32, #tpu.memory_space<vmem>>, vector<1x128xf32>
    %10 = vector.broadcast %9 : vector<1x128xf32> to vector<8x128xf32>
    %11 = arith.mulf %8, %10 : vector<8x128xf32>
    %c0_8 = arith.constant 0 : index
    %c0_9 = arith.constant 0 : index
    %12 = vector.load %arg7[%c0_8, %c0_9] : memref<8x1xi32, #tpu.memory_space<vmem>>, vector<8x1xi32>
    %c128_i32 = arith.constant 128 : i32
    %13 = arith.muli %arg1, %c128_i32 : i32
    %14 = vector.broadcast %13 : i32 to vector<8x1xi32>
    %15 = arith.subi %12, %14 : vector<8x1xi32>
    %16 = tpu.iota {dimensions = array<i32: 1>} : vector<8x128xi32>
    %17 = vector.broadcast %15 : vector<8x1xi32> to vector<8x128xi32>
    %18 = arith.cmpi eq, %16, %17 : vector<8x128xi32>
    %c0_i32_10 = arith.constant 0 : i32
    %19 = vector.broadcast %c0_i32_10 : i32 to vector<8x1xi32>
    %20 = arith.cmpi sge, %15, %19 : vector<8x1xi32>
    %c128_i32_11 = arith.constant 128 : i32
    %21 = vector.broadcast %c128_i32_11 : i32 to vector<8x1xi32>
    %22 = arith.cmpi slt, %15, %21 : vector<8x1xi32>
    %23 = arith.andi %20, %22 : vector<8x1xi1>
    %cst_12 = arith.constant 0.000000e+00 : f32
    %24 = vector.broadcast %cst_12 : f32 to vector<8x128xf32>
    %25 = arith.select %18, %11, %24 : vector<8x128xi1>, vector<8x128xf32>
    %cst_13 = arith.constant dense<0.000000e+00> : vector<8xf32>
    %26 = vector.multi_reduction <add>, %25, %cst_13 [1] : vector<8x128xf32> to vector<8xf32>
    %27 = vector.shape_cast %26 : vector<8xf32> to vector<8x1xf32>
    %cst_14 = arith.constant 0.0333333351 : f32
    %28 = vector.broadcast %cst_14 : f32 to vector<8x1xf32>
    %29 = arith.mulf %27, %28 : vector<8x1xf32>
    %30 = arith.mulf %29, %29 : vector<8x1xf32>
    %cst_15 = arith.constant 1.000000e+00 : f32
    %31 = vector.broadcast %cst_15 : f32 to vector<8x1xf32>
    %32 = arith.subf %31, %30 : vector<8x1xf32>
    %cst_16 = arith.constant 0.000000e+00 : f32
    %33 = vector.broadcast %cst_16 : f32 to vector<8x1xf32>
    %34 = arith.maximumf %32, %33 : vector<8x1xf32>
    %35 = math.sqrt %34 : vector<8x1xf32>
    %cst_17 = arith.constant 0.87758255 : f32
    %36 = vector.broadcast %cst_17 : f32 to vector<8x1xf32>
    %37 = arith.mulf %29, %36 : vector<8x1xf32>
    %cst_18 = arith.constant 0.47942555 : f32
    %38 = vector.broadcast %cst_18 : f32 to vector<8x1xf32>
    %39 = arith.mulf %35, %38 : vector<8x1xf32>
    %40 = arith.subf %37, %39 : vector<8x1xf32>
    %cst_19 = arith.constant -0.87758255 : f32
    %41 = vector.broadcast %cst_19 : f32 to vector<8x1xf32>
    %42 = arith.cmpf ogt, %29, %41 : vector<8x1xf32>
    %cst_20 = arith.constant 0.239712775 : f32
    %43 = vector.broadcast %cst_20 : f32 to vector<8x1xf32>
    %44 = arith.subf %29, %43 : vector<8x1xf32>
    %45 = arith.select %42, %40, %44 : vector<8x1xi1>, vector<8x1xf32>
    %cst_21 = arith.constant 3.000000e+01 : f32
    %46 = vector.broadcast %cst_21 : f32 to vector<8x1xf32>
    %47 = arith.mulf %45, %46 : vector<8x1xf32>
    %48 = vector.shape_cast %47 : vector<8x1xf32> to vector<8x1xf32>
    %49 = vector.broadcast %48 : vector<8x1xf32> to vector<8x128xf32>
    %50 = arith.select %18, %49, %11 : vector<8x128xi1>, vector<8x128xf32>
    %c0_22 = arith.constant 0 : index
    %c0_23 = arith.constant 0 : index
    %51 = vector.load %arg8[%c0_22, %c0_23] : memref<8x128xf32, #tpu.memory_space<vmem>>, vector<8x128xf32>
    tpu.vector_store %arg8[%c0_22, %c0_23], %50 {strides = array<i32>} : memref<8x128xf32, #tpu.memory_space<vmem>>, vector<8x128xf32>,
    %c0_24 = arith.constant 0 : index
    %c0_25 = arith.constant 0 : index
    %52 = vector.load %arg10[%c0_24, %c0_25] : memref<8x1xf32, #tpu.memory_space<vmem>>, vector<8x1xf32>
    %c0_26 = arith.constant 0 : index
    %c0_27 = arith.constant 0 : index
    %53 = vector.load %arg5[%c0_26, %c0_27] : memref<1x128xf32, #tpu.memory_space<vmem>>, vector<1x128xf32>
    %54 = vector.broadcast %53 : vector<1x128xf32> to vector<8x128xf32>
    %55 = arith.addf %50, %54 : vector<8x128xf32>
    %56 = math.exp %55 : vector<8x128xf32>
    %cst_28 = arith.constant dense<0.000000e+00> : vector<8xf32>
    %57 = vector.multi_reduction <add>, %56, %cst_28 [1] : vector<8x128xf32> to vector<8xf32>
    %58 = vector.shape_cast %57 : vector<8xf32> to vector<8x1xf32>
    %59 = arith.addf %52, %58 : vector<8x1xf32>
    %c0_29 = arith.constant 0 : index
    %c0_30 = arith.constant 0 : index
    %60 = vector.load %arg10[%c0_29, %c0_30] : memref<8x1xf32, #tpu.memory_space<vmem>>, vector<8x1xf32>
    tpu.vector_store %arg10[%c0_29, %c0_30], %59 {strides = array<i32>} : memref<8x1xf32, #tpu.memory_space<vmem>>, vector<8x1xf32>,
    %c0_31 = arith.constant 0 : index
    %c0_32 = arith.constant 0 : index
    %61 = vector.load %arg11[%c0_31, %c0_32] : memref<8x1xf32, #tpu.memory_space<vmem>>, vector<8x1xf32>
    %cst_33 = arith.constant 0.000000e+00 : f32
    %62 = vector.broadcast %cst_33 : f32 to vector<8x1xf32>
    %63 = arith.select %23, %47, %62 : vector<8x1xi1>, vector<8x1xf32>
    %64 = arith.addf %61, %63 : vector<8x1xf32>
    %c0_34 = arith.constant 0 : index
    %c0_35 = arith.constant 0 : index
    %65 = vector.load %arg11[%c0_34, %c0_35] : memref<8x1xf32, #tpu.memory_space<vmem>>, vector<8x1xf32>
    tpu.vector_store %arg11[%c0_34, %c0_35], %64 {strides = array<i32>} : memref<8x1xf32, #tpu.memory_space<vmem>>, vector<8x1xf32>,
    %c0_i32_36 = arith.constant 0 : i32
    %66 = arith.cmpi eq, %arg1, %c0_i32_36 : i32
    %67 = arith.extui %66 : i1 to i32
    %c0_i32_37 = arith.constant 0 : i32
    %68 = arith.cmpi ne, %67, %c0_i32_37 : i32
    scf.if %68 {
      %c0_38 = arith.constant 0 : index
      %c0_39 = arith.constant 0 : index
      %69 = vector.load %arg10[%c0_38, %c0_39] : memref<8x1xf32, #tpu.memory_space<vmem>>, vector<8x1xf32>
      %70 = math.log %69 : vector<8x1xf32>
      %cst_40 = arith.constant 3.000000e+01 : f32
      %71 = vector.broadcast %cst_40 : f32 to vector<8x1xf32>
      %72 = arith.addf %71, %70 : vector<8x1xf32>
      %c0_41 = arith.constant 0 : index
      %c0_42 = arith.constant 0 : index
      %73 = vector.load %arg11[%c0_41, %c0_42] : memref<8x1xf32, #tpu.memory_space<vmem>>, vector<8x1xf32>
      %74 = arith.subf %72, %73 : vector<8x1xf32>
      %c0_43 = arith.constant 0 : index
      %c0_44 = arith.constant 0 : index
      %75 = vector.load %arg9[%c0_43, %c0_44] : memref<8x1xf32, #tpu.memory_space<vmem>>, vector<8x1xf32>
      tpu.vector_store %arg9[%c0_43, %c0_44], %74 {strides = array<i32>} : memref<8x1xf32, #tpu.memory_space<vmem>>, vector<8x1xf32>,
    } else {
    }
    return
  }
  func.func @transform_0(%arg0: i32, %arg1: i32) -> (i32, i32) {
    %c0_i32 = arith.constant 0 : i32
    %c0_i32_0 = arith.constant 0 : i32
    return %arg0, %c0_i32 : i32, i32
  }
  func.func @transform_1(%arg0: i32, %arg1: i32) -> (i32, i32) {
    %c0_i32 = arith.constant 0 : i32
    %c0_i32_0 = arith.constant 0 : i32
    return %arg1, %c0_i32 : i32, i32
  }
  func.func @transform_2(%arg0: i32, %arg1: i32) -> (i32, i32) {
    %c0_i32 = arith.constant 0 : i32
    %c0_i32_0 = arith.constant 0 : i32
    return %c0_i32, %arg1 : i32, i32
  }
  func.func @transform_3(%arg0: i32, %arg1: i32) -> (i32, i32) {
    %c0_i32 = arith.constant 0 : i32
    %c0_i32_0 = arith.constant 0 : i32
    return %c0_i32, %arg1 : i32, i32
  }
  func.func @transform_4(%arg0: i32, %arg1: i32) -> (i32, i32) {
    %c0_i32 = arith.constant 0 : i32
    %c0_i32_0 = arith.constant 0 : i32
    return %arg0, %c0_i32 : i32, i32
  }
  func.func @transform_5(%arg0: i32, %arg1: i32) -> (i32, i32) {
    %c0_i32 = arith.constant 0 : i32
    %c0_i32_0 = arith.constant 0 : i32
    return %arg0, %c0_i32 : i32, i32
  }
  func.func @transform_6(%arg0: i32, %arg1: i32) -> (i32, i32) {
    %c0_i32 = arith.constant 0 : i32
    return %arg0, %arg1 : i32, i32
  }
  func.func @transform_7(%arg0: i32, %arg1: i32) -> (i32, i32) {
    %c0_i32 = arith.constant 0 : i32
    %c0_i32_0 = arith.constant 0 : i32
    return %arg0, %c0_i32 : i32, i32
  }
}

</mosaic_0001>

<bundles_post_ra>
// kernel: tpu_custom_call.1
= control target key start
LH: loop header
LB: loop body
LE: loop exit
PB: predicated region body
PF: predicated region fallthrough
CT: control target
= control target key end

     0   :  { %vm50_vm0 = vcmask 261120   ;;  %vm30_vm1 = vcmask 7168   ;;  %v411_v2 = vmov 0.0|0.0   ;;  %v412_v5 = vmov 0.0   ;;  %s569_s0 = inlined_call_operand.vmem [shape: f32[8,32], index: 0, kind: input, shape index: {}]   ;;  %s570_s1 = inlined_call_operand.vmem [shape: f32[128,32], index: 1, kind: input, shape index: {}]   ;;  %s571_s2 = inlined_call_operand.vmem [shape: f32[1,128], index: 2, kind: input, shape index: {}]   ;;  %s572_s3 = inlined_call_operand.vmem [shape: f32[1,128], index: 3, kind: input, shape index: {}]   ;;  %s573_s4 = inlined_call_operand.vmem [shape: f32[8,1], index: 4, kind: input, shape index: {}]   ;;  %s574_s5 = inlined_call_operand.vmem [shape: s32[8,1], index: 5, kind: input, shape index: {}]   ;;  %s575_s6 = inlined_call_operand.hbm [shape: f32[8,128], index: 6, kind: output, shape index: {0}]   ;;  %s576_s7 = inlined_call_operand.vmem [shape: f32[8,1], index: 7, kind: output, shape index: {1}]  }
   0x1   :  { %v34_v0 = vld [vmem:[%s570_s1] sm:$0xff]  ;;  %v35_v1 = vld [vmem:[%s570_s1 + $0x8] sm:$0xff]  ;;  %343 = vmatprep.subr.bf16.mxu0 %v411_v2  ;;  %vm464_vm2 = vmpackc.low %vm50_vm0, %vm50_vm0  ;;  %31 = vst.msk [vmem:[#allocation2] sm:$0xff] %vm30_vm1, %v412_v5  ;;  %vm413_vm3 = vmmov 0   ;;  %v414_v6 = vmov 0  }
   0x2   :  { %v344_v3 = vpack.c.bf16 %v35_v1, %v34_v0  ;;  %32 = vst.msk [vmem:[#allocation3] sm:$0xff] %vm30_vm1, %v412_v5  ;;  %340 = vmatprep.mubr.msk.f32.mxu0 %vm413_vm3, %v412_v5  ;;  %380 = vset.pattern.permute.xlu0 %v414_v6  ;;  %v36_v7 = vld [vmem:[%s570_s1 + $0x10] sm:$0xff]  ;;  %v37_v8 = vld [vmem:[%s570_s1 + $0x18] sm:$0xff]  ;;  %v172_v9 = vld [vmem:[%s573_s4] sm:$0xff] }
   0x4   :  { %346 = vmatpush3.bf16.xpose.msk.msra.mxu0 %vm464_vm2, %v344_v3 }
   0x5   :  { %347 = vmatprep.subr.bf16.mxu0 %v411_v2 }
   0x6   :  { %13 = vsyncpa [#allocation5], 0  ;;  %v348_v10 = vpack.c.bf16 %v37_v8, %v36_v7  ;;  %175 = vperm.xlu0 %380, %v172_v9   ;;  %v484_v11 = vld [vmem:[%s574_s5] sm:$0xff]  ;;  %v39_v13 = vld [vmem:[%s570_s1 + $0x28] sm:$0xff]  ;;  %v191_v32 = vlaneseq }
   0x7   :  { %v38_v12 = vld [vmem:[%s570_s1 + $0x20] sm:$0xff]  ;;  %v40_v15 = vld [vmem:[%s570_s1 + $0x30] sm:$0xff]  ;;  %v41_v16 = vld [vmem:[%s570_s1 + $0x38] sm:$0xff]  ;;  %vm197_vm7 = vcmp.ge.s32.totalorder %v484_v11, 0  ;;  %vm198_vm8 = vcmp.lt.s32.totalorder %v484_v11, 128 }
   0x8   :  { %v352_v14 = vpack.c.bf16 %v39_v13, %v38_v12  ;;  %v356_v17 = vpack.c.bf16 %v41_v16, %v40_v15  ;;  %v42_v18 = vld [vmem:[%s570_s1 + $0x40] sm:$0xff]  ;;  %v43_v19 = vld [vmem:[%s570_s1 + $0x48] sm:$0xff]  ;;  %v44_v21 = vld [vmem:[%s570_s1 + $0x50] sm:$0xff]  ;;  %v192_v33 = vand.u32 127, %v191_v32 }
   0x9   :  { %v360_v20 = vpack.c.bf16 %v43_v19, %v42_v18  ;;  %v45_v22 = vld [vmem:[%s570_s1 + $0x58] sm:$0xff]  ;;  %v46_v24 = vld [vmem:[%s570_s1 + $0x60] sm:$0xff]  ;;  %v47_v25 = vld [vmem:[%s570_s1 + $0x68] sm:$0xff] }
   0xa   :  { %194 = vperm.xlu0 %380, %v484_v11   ;;  %v364_v23 = vpack.c.bf16 %v45_v22, %v44_v21  ;;  %v368_v26 = vpack.c.bf16 %v47_v25, %v46_v24  ;;  %v48_v27 = vld [vmem:[%s570_s1 + $0x70] sm:$0xff]  ;;  %v49_v28 = vld [vmem:[%s570_s1 + $0x78] sm:$0xff]  ;;  %v33_v30 = vld [vmem:[%s569_s0] sm:$0xff] }
   0xb   :  { %v372_v29 = vpack.c.bf16 %v49_v28, %v48_v27  ;;  %v288_v35 = vld [vmem:[%s571_s2] ss:$0 sm:$0xff]  ;;  %vm199_vm10 = vmand %vm197_vm7, %vm198_vm8  ;;  %v239_v57 = vld [vmem:[#allocation3] sm:$0xff]  ;;  %s415_s2 = smov [#allocation4]  }
   0xc   :  { %350 = vmatpush3.bf16.xpose.msk.msra.mxu0 %vm464_vm2, %v348_v10  ;;  %v290_v58 = vld [vmem:[%s572_s3] ss:$0 sm:$0xff]  ;;  %s259_s4 = sshll.u32 %s415_s2, 4  ;;  %s260_s4 = int_to_ptr.vmem [resolvable:$true] %s259_s4 }
   0xd   :  { %351 = vmatprep.subr.bf16.mxu0 %v411_v2  ;;  %s387_s5 = scalar_lea.vmem %s260_s4, 128  ;;  %p392_p1 = scmp.lt.s32.totalorder %s260_s4, %s260_s4 }
   0xe   :  { %p388_p0 = scmp.ne.s32.totalorder %s260_s4, %s387_s5  ;;  %p393_p2 = scmp.lt.s32.totalorder %s387_s5, %s387_s5 }
  0x10   :  { %p394_p3 = por %p393_p2, %p392_p1 }
  0x12   :  { %p395_p4 = pnand %p394_p3, %p388_p0 }
  0x14   :  { %354 = vmatpush3.bf16.xpose.msk.msra.mxu0 %vm464_vm2, %v352_v14 }
  0x15   :  { %355 = vmatprep.subr.bf16.mxu0 %v411_v2 }
  0x1c   :  { %358 = vmatpush3.bf16.xpose.msk.msra.mxu0 %vm464_vm2, %v356_v17 }
  0x1d   :  { %359 = vmatprep.subr.bf16.mxu0 %v411_v2 }
  0x24   :  { %362 = vmatpush3.bf16.xpose.msk.msra.mxu0 %vm464_vm2, %v360_v20 }
  0x25   :  { %363 = vmatprep.subr.bf16.mxu0 %v411_v2 }
  0x2c   :  { %366 = vmatpush3.bf16.xpose.msk.msra.mxu0 %vm464_vm2, %v364_v23 }
  0x2d   :  { %367 = vmatprep.subr.bf16.mxu0 %v411_v2 }
  0x34   :  { %370 = vmatpush3.bf16.xpose.msk.msra.mxu0 %vm464_vm2, %v368_v26 }
  0x35   :  { %371 = vmatprep.subr.bf16.mxu0 %v411_v2 }
  0x3c   :  { %374 = vmatpush3.bf16.xpose.msk.msra.mxu0 %vm464_vm2, %v372_v29 }
  0x43   :  { %341 = vmatmul.mubr.msk.f32.vlgmr.msra.gmra.mrb[0].mxu0 %vm50_vm0, %v33_v30 }
  0x85   :  { %v176_v31 = vpop.permute.xlu0 %175 }
  0x89   :  { %v195_v36 = vpop.permute.xlu0 %194 }
  0x8a   :  { %vm196_vm4 = vcmp.eq.s32.totalorder %v192_v33, %v195_v36 }
 0x116   :  { %v168_v34 = vpop.f32.mrb[0].mxu0 }
 0x117   :  { %v178_v37 = vmul.f32 %v176_v31, %v168_v34  ;;  %v342_v38 = vpop.f32.mrb[1].mxu0 }
 0x119   :  { %v186_v39 = vmul.f32 %v288_v35, %v178_v37 }
 0x11b   :  { %v200_v40 = vsel %vm196_vm4, %v186_v39, 0.0 }
 0x11c   :  { %201 = vadd.xlane.f32.xlu1 %v200_v40 }
 0x1a9   :  { %v202_v41 = vpop.xlane.xlu1 %201 }
 0x1aa   :  { %v203_v42 = vmul.f32 0.033333335, %v202_v41 }
 0x1ac   :  { %v204_v43 = vmul.f32 %v203_v42, %v203_v42  ;;  %v214_v51 = vmul.f32 0.87758255, %v203_v42  ;;  %v289_v54 = vadd.f32 -0.23971277, %v203_v42  ;;  %vm217_vm9 = vcmp.gt.f32.partialorder %v203_v42, -0.87758255 }
 0x1ae   :  { %v205_v44 = vsub.f32 1.0, %v204_v43 }
 0x1b0   :  { %v206_v45 = vmax.f32 %v205_v44, 0.0 }
 0x1b2   :  { %381 = vrsqrt.f32 %v206_v45  ;;  %vm209_vm5 = vcmp.eq.f32.partialorder %v206_v45, inf  ;;  %v212_v48 = vand.u32 2147483648, %v206_v45  ;;  %vm211_vm6 = vcmp.eq.f32.partialorder %v206_v45, 0.0 }
 0x1bc   :  { %v382_v46 = vpop.eup %381 }
 0x1bd   :  { %v208_v47 = vmul.f32 %v382_v46, %v206_v45 }
 0x1bf   :  { %v210_v49 = vsel %vm209_vm5, %v206_v45, %v208_v47 }
 0x1c0   :  { %v213_v50 = vsel %vm211_vm6, %v212_v48, %v210_v49 }
 0x1c1   :  { %v215_v52 = vmul.f32 0.47942555, %v213_v50 }
 0x1c3   :  { %v216_v53 = vsub.f32 %v214_v51, %v215_v52 }
 0x1c5   :  { %v219_v55 = vsel %vm217_vm9, %v216_v53, %v289_v54 }
 0x1c6   :  { %v220_v56 = vmul.f32 30.0, %v219_v55 }
 0x1c8   :  { %v240_v59 = vsel %vm199_vm10, %v220_v56, 0.0  ;;  %v221_v60 = vsel %vm196_vm4, %v220_v56, %v186_v39 }
 0x1c9   :  { %v241_v61 = vadd.f32 %v240_v59, %v239_v57  ;;  %v231_v62 = vadd.f32 %v290_v58, %v221_v60  ;;  %222 = vst [vmem:[#allocation4] sm:$0xff] %v221_v60 }
 0x1cb   :  { %242 = vst.msk [vmem:[#allocation3] sm:$0xff] %vm30_vm1, %v241_v61  ;;  %v232_v63 = vmul.f32 1.442695, %v231_v62 }
 0x1cd   :  { %383 = vpow2.f32 %v232_v63 }
 0x1d7   :  { %v384_v0 = vpop.eup %383 }
 0x1d8   :  { %234 = vadd.xlane.f32.xlu1 %v384_v0 }
 0x1d9   :  { %398 = shalt.err (!%p395_p4)
}
 0x1da   :  { %s399_s17 = scalar_lea.hbm %s575_s6, 128 }
 0x1db   :  { %p400_p5 = scmp.ne.s32.totalorder %s575_s6, %s399_s17  ;;  %p403_p6 = scmp.lt.u32.totalorder %s399_s17, %s575_s6 }
 0x1dd   :  { %p405_p7 = pnand %p403_p6, %p400_p5 }
 0x1df   :  { %408 = shalt.err (!%p405_p7)
}
 0x1e0   :  { %262 = dma.vmem_to_hbm [thread:$0]  %s260_s4, 128, %s575_s6, [#allocation5]   ;;  %v223_v1 = vld [vmem:[#allocation2] sm:$0xff]  ;;  %v250_v8 = vld [vmem:[#allocation3] sm:$0xff] }
 0x265   :  { %v235_v2 = vpop.xlane.xlu1 %234 }
 0x266   :  { %v236_v3 = vadd.f32 %v235_v2, %v223_v1 }
 0x268   :  { %238 = vst.msk [vmem:[#allocation2] sm:$0xff] %vm30_vm1, %v236_v3 }
 0x26f   :  { %v246_v4 = vld [vmem:[#allocation2] sm:$0xff] }
 0x270   :  { %385 = vlog2.f32 %v246_v4 }
 0x27a   :  { %v386_v5 = vpop.eup %385 }
 0x27b   :  { %v248_v6 = vmul.f32 0.6931472, %v386_v5 }
 0x27d   :  { %v249_v7 = vadd.f32 30.0, %v248_v6 }
 0x27f   :  { %v251_v9 = vsub.f32 %v249_v7, %v250_v8 }
 0x281   :  { %252 = vst.msk [vmem:[%s576_s7] sm:$0xff] %vm30_vm1, %v251_v9 }
 0x282   :  { %409 = dma.done.wait [#allocation5], 128  }
 0x283   :  { %410 = vsyncadd [#allocation5], 4294967168 }
 0x284   :  { %270 = vsyncpa [#allocation5], 1 }

</bundles_post_ra>
